<compile_context>
chip_gen: v7x
topology: tpu7x:2x2x1
jax: 0.10.0
libtpu: 0.0.40
codegen_flags: <defaults>
</compile_context>

<pallas_src>
import jax
import jax.numpy as jnp
from jax.experimental import pallas as pl
from jax.experimental.pallas import tpu as pltpu


def attack_mlp_kernel(x_ref, w1_ref, b1_ref, w2_ref, b2_ref, w3_ref, b3_ref,
                      wc_ref, bc_ref, o_ref):
    # x / weights are bf16 (MXU-native), biases f32; accumulate in f32,
    # pointwise epilogue (bias + tanh) in f32.
    h = jnp.dot(x_ref[...], w1_ref[...], preferred_element_type=jnp.float32)
    h = jnp.tanh(h + b1_ref[...])
    h = jnp.dot(h.astype(jnp.bfloat16), w2_ref[...],
                preferred_element_type=jnp.float32)
    h = jnp.tanh(h + b2_ref[...])
    h = jnp.dot(h.astype(jnp.bfloat16), w3_ref[...],
                preferred_element_type=jnp.float32)
    h = jnp.tanh(h + b3_ref[...])
    # Dropout is identity at inference. Classifier head (lane-padded N).
    logits = jnp.dot(h.astype(jnp.bfloat16), wc_ref[...],
                     preferred_element_type=jnp.float32) + bc_ref[...]
    o_ref[...] = logits.astype(o_ref.dtype)


def attack_model_forward(hidden_states, params, *, num_labels, batch_tile=256):
    """hidden_states: [B, H] pooled BERT output (any float dtype).
    params: (w1,b1,w2,b2,w3,b3,wc,bc); weights [in,out] bf16, biases [1,out] f32.
    Returns logits [B, num_labels] in f32."""
    w1, b1, w2, b2, w3, b3, wc, bc = params
    B, H = hidden_states.shape
    LANES = 128

    # Lane-pad the classifier so the last matmul and final store are lane-dense.
    nl_pad = ((num_labels + LANES - 1) // LANES) * LANES
    wc_p = jnp.zeros((H, nl_pad), jnp.bfloat16).at[:, :num_labels].set(
        wc.astype(jnp.bfloat16))
    bc_p = jnp.zeros((1, nl_pad), jnp.float32).at[:, :num_labels].set(
        bc.astype(jnp.float32))

    # Batch tiling: tile of up to `batch_tile` rows (multiple of 8 sublanes).
    tb = min(batch_tile, ((B + 7) // 8) * 8)
    B_pad = ((B + tb - 1) // tb) * tb
    x = hidden_states.astype(jnp.bfloat16)
    if B_pad != B:
        x = jnp.zeros((B_pad, H), jnp.bfloat16).at[:B].set(x)
    nb = B_pad // tb

    # Weights stay VMEM-resident across the batch grid (index_map pinned to (0,0)).
    w_spec = pl.BlockSpec((H, H), lambda i: (0, 0))
    b_spec = pl.BlockSpec((1, H), lambda i: (0, 0))

    cost = pl.CostEstimate(
        flops=2 * B_pad * H * (3 * H + nl_pad),
        transcendentals=3 * B_pad * H,
        bytes_accessed=(B_pad * H * 2                      # x (bf16)
                        + 3 * H * H * 2 + H * nl_pad * 2   # weights (bf16)
                        + 3 * H * 4 + nl_pad * 4           # biases (f32)
                        + B_pad * nl_pad * 4),             # output (f32)
    )

    out_pad = pl.pallas_call(
        attack_mlp_kernel,
        out_shape=jax.ShapeDtypeStruct((B_pad, nl_pad), jnp.float32),
        grid_spec=pltpu.PrefetchScalarGridSpec(
            num_scalar_prefetch=0,
            grid=(nb,),
            in_specs=[
                pl.BlockSpec((tb, H), lambda i: (i, 0)),          # x
                w_spec, b_spec,                                   # mlp layer 1
                w_spec, b_spec,                                   # mlp layer 2
                w_spec, b_spec,                                   # mlp layer 3
                pl.BlockSpec((H, nl_pad), lambda i: (0, 0)),      # classifier W
                pl.BlockSpec((1, nl_pad), lambda i: (0, 0)),      # classifier b
            ],
            out_specs=pl.BlockSpec((tb, nl_pad), lambda i: (i, 0)),
        ),
        compiler_params=pltpu.CompilerParams(
            dimension_semantics=("parallel",)),
        cost_estimate=cost,
    )(x, w1, b1, w2, b2, w3, b3, wc_p, bc_p)

    return out_pad[:B, :num_labels]


def init_params(key, hidden_size, num_labels):
    """Deterministic synthetic parameters (PyTorch-Linear-like uniform init).
    Weights stored bf16 (HBM traffic halved), biases f32."""
    ks = jax.random.split(key, 8)

    def lin(kw, kb, fan_in, fan_out):
        bound = 1.0 / jnp.sqrt(fan_in)
        w = jax.random.uniform(kw, (fan_in, fan_out), jnp.float32, -bound, bound)
        b = jax.random.uniform(kb, (1, fan_out), jnp.float32, -bound, bound)
        return w.astype(jnp.bfloat16), b

    w1, b1 = lin(ks[0], ks[1], hidden_size, hidden_size)
    w2, b2 = lin(ks[2], ks[3], hidden_size, hidden_size)
    w3, b3 = lin(ks[4], ks[5], hidden_size, hidden_size)
    wc, bc = lin(ks[6], ks[7], hidden_size, num_labels)
    return (w1, b1, w2, b2, w3, b3, wc, bc)


def reference_forward(hidden_states, params):
    """Pure-JAX reference mimicking the kernel's mixed precision
    (bf16 matmul inputs, f32 accumulation and epilogue)."""
    w1, b1, w2, b2, w3, b3, wc, bc = params
    x = hidden_states.astype(jnp.bfloat16)
    h = jnp.tanh(jnp.dot(x, w1, preferred_element_type=jnp.float32) + b1)
    h = jnp.tanh(jnp.dot(h.astype(jnp.bfloat16), w2,
                         preferred_element_type=jnp.float32) + b2)
    h = jnp.tanh(jnp.dot(h.astype(jnp.bfloat16), w3,
                         preferred_element_type=jnp.float32) + b3)
    return jnp.dot(h.astype(jnp.bfloat16), wc,
                   preferred_element_type=jnp.float32) + bc


if __name__ == "__main__":
    B = 8            # batch
    H = 128          # bert hidden_size (small, lane-aligned)
    NUM_LABELS = 2   # sensitive-attribute classes

    key = jax.random.PRNGKey(0)
    k_x, k_p = jax.random.split(key)

    # Stand-in for the frozen BERT pooled output, shape [B, H].
    hidden_states = jax.random.normal(k_x, (B, H), dtype=jnp.float32)
    params = init_params(k_p, H, NUM_LABELS)

    fwd = jax.jit(lambda x, p: attack_model_forward(x, p, num_labels=NUM_LABELS))
    logits = jax.block_until_ready(fwd(hidden_states, params))

    ref = reference_forward(hidden_states, params)
    assert logits.shape == (B, NUM_LABELS)
    assert jnp.allclose(logits, ref, atol=1e-3, rtol=1e-3), (
        float(jnp.max(jnp.abs(logits - ref))))

    print("KERNEL_OK")
</pallas_src>

<mosaic_0001>
module attributes {stable_mosaic.version = 11 : i64} {
  func.func @attack_mlp_kernel(%arg0: i32, %arg1: memref<8x128xbf16, #tpu.memory_space<vmem>>, %arg2: memref<128x128xbf16, #tpu.memory_space<vmem>>, %arg3: memref<1x128xf32, #tpu.memory_space<vmem>>, %arg4: memref<128x128xbf16, #tpu.memory_space<vmem>>, %arg5: memref<1x128xf32, #tpu.memory_space<vmem>>, %arg6: memref<128x128xbf16, #tpu.memory_space<vmem>>, %arg7: memref<1x128xf32, #tpu.memory_space<vmem>>, %arg8: memref<128x128xbf16, #tpu.memory_space<vmem>>, %arg9: memref<1x128xf32, #tpu.memory_space<vmem>>, %arg10: memref<8x128xf32, #tpu.memory_space<vmem>>) attributes {dimension_semantics = [#tpu.dimension_semantics<parallel>], iteration_bounds = array<i64: 1>, scalar_prefetch = 0 : i64, scratch_operands = 0 : i64, tpu.core_type = #tpu.core_type<tc>, window_params = [{transform_indices = @transform_0, window_bounds = array<i64: 8, 128>}, {pipeline_mode = #tpu.pipeline_mode<synchronous>, transform_indices = @transform_1, window_bounds = array<i64: 128, 128>}, {pipeline_mode = #tpu.pipeline_mode<synchronous>, transform_indices = @transform_2, window_bounds = array<i64: 1, 128>}, {pipeline_mode = #tpu.pipeline_mode<synchronous>, transform_indices = @transform_3, window_bounds = array<i64: 128, 128>}, {pipeline_mode = #tpu.pipeline_mode<synchronous>, transform_indices = @transform_4, window_bounds = array<i64: 1, 128>}, {pipeline_mode = #tpu.pipeline_mode<synchronous>, transform_indices = @transform_5, window_bounds = array<i64: 128, 128>}, {pipeline_mode = #tpu.pipeline_mode<synchronous>, transform_indices = @transform_6, window_bounds = array<i64: 1, 128>}, {pipeline_mode = #tpu.pipeline_mode<synchronous>, transform_indices = @transform_7, window_bounds = array<i64: 128, 128>}, {pipeline_mode = #tpu.pipeline_mode<synchronous>, transform_indices = @transform_8, window_bounds = array<i64: 1, 128>}, {transform_indices = @transform_9, window_bounds = array<i64: 8, 128>}]} {
    %c0 = arith.constant 0 : index
    %c0_0 = arith.constant 0 : index
    %0 = vector.load %arg1[%c0, %c0_0] : memref<8x128xbf16, #tpu.memory_space<vmem>>, vector<8x128xbf16>
    %c0_1 = arith.constant 0 : index
    %c0_2 = arith.constant 0 : index
    %1 = vector.load %arg2[%c0_1, %c0_2] : memref<128x128xbf16, #tpu.memory_space<vmem>>, vector<128x128xbf16>
    %cst = arith.constant dense<0.000000e+00> : vector<8x128xf32>
    %2 = tpu.matmul %0, %1, %cst {dimension_numbers = #tpu.dot_dimension_numbers<[1], [0], [0], [1], [0, 0, 1, 1], [], []>} : vector<8x128xbf16>, vector<128x128xbf16>, vector<8x128xf32> -> vector<8x128xf32>
    %c0_3 = arith.constant 0 : index
    %c0_4 = arith.constant 0 : index
    %3 = vector.load %arg3[%c0_3, %c0_4] : memref<1x128xf32, #tpu.memory_space<vmem>>, vector<1x128xf32>
    %4 = vector.broadcast %3 : vector<1x128xf32> to vector<8x128xf32>
    %5 = arith.addf %2, %4 : vector<8x128xf32>
    %6 = math.tanh %5 : vector<8x128xf32>
    %7 = arith.truncf %6 : vector<8x128xf32> to vector<8x128xbf16>
    %c0_5 = arith.constant 0 : index
    %c0_6 = arith.constant 0 : index
    %8 = vector.load %arg4[%c0_5, %c0_6] : memref<128x128xbf16, #tpu.memory_space<vmem>>, vector<128x128xbf16>
    %cst_7 = arith.constant dense<0.000000e+00> : vector<8x128xf32>
    %9 = tpu.matmul %7, %8, %cst_7 {dimension_numbers = #tpu.dot_dimension_numbers<[1], [0], [0], [1], [0, 0, 1, 1], [], []>} : vector<8x128xbf16>, vector<128x128xbf16>, vector<8x128xf32> -> vector<8x128xf32>
    %c0_8 = arith.constant 0 : index
    %c0_9 = arith.constant 0 : index
    %10 = vector.load %arg5[%c0_8, %c0_9] : memref<1x128xf32, #tpu.memory_space<vmem>>, vector<1x128xf32>
    %11 = vector.broadcast %10 : vector<1x128xf32> to vector<8x128xf32>
    %12 = arith.addf %9, %11 : vector<8x128xf32>
    %13 = math.tanh %12 : vector<8x128xf32>
    %14 = arith.truncf %13 : vector<8x128xf32> to vector<8x128xbf16>
    %c0_10 = arith.constant 0 : index
    %c0_11 = arith.constant 0 : index
    %15 = vector.load %arg6[%c0_10, %c0_11] : memref<128x128xbf16, #tpu.memory_space<vmem>>, vector<128x128xbf16>
    %cst_12 = arith.constant dense<0.000000e+00> : vector<8x128xf32>
    %16 = tpu.matmul %14, %15, %cst_12 {dimension_numbers = #tpu.dot_dimension_numbers<[1], [0], [0], [1], [0, 0, 1, 1], [], []>} : vector<8x128xbf16>, vector<128x128xbf16>, vector<8x128xf32> -> vector<8x128xf32>
    %c0_13 = arith.constant 0 : index
    %c0_14 = arith.constant 0 : index
    %17 = vector.load %arg7[%c0_13, %c0_14] : memref<1x128xf32, #tpu.memory_space<vmem>>, vector<1x128xf32>
    %18 = vector.broadcast %17 : vector<1x128xf32> to vector<8x128xf32>
    %19 = arith.addf %16, %18 : vector<8x128xf32>
    %20 = math.tanh %19 : vector<8x128xf32>
    %21 = arith.truncf %20 : vector<8x128xf32> to vector<8x128xbf16>
    %c0_15 = arith.constant 0 : index
    %c0_16 = arith.constant 0 : index
    %22 = vector.load %arg8[%c0_15, %c0_16] : memref<128x128xbf16, #tpu.memory_space<vmem>>, vector<128x128xbf16>
    %cst_17 = arith.constant dense<0.000000e+00> : vector<8x128xf32>
    %23 = tpu.matmul %21, %22, %cst_17 {dimension_numbers = #tpu.dot_dimension_numbers<[1], [0], [0], [1], [0, 0, 1, 1], [], []>} : vector<8x128xbf16>, vector<128x128xbf16>, vector<8x128xf32> -> vector<8x128xf32>
    %c0_18 = arith.constant 0 : index
    %c0_19 = arith.constant 0 : index
    %24 = vector.load %arg9[%c0_18, %c0_19] : memref<1x128xf32, #tpu.memory_space<vmem>>, vector<1x128xf32>
    %25 = vector.broadcast %24 : vector<1x128xf32> to vector<8x128xf32>
    %26 = arith.addf %23, %25 : vector<8x128xf32>
    %c0_20 = arith.constant 0 : index
    %c0_21 = arith.constant 0 : index
    %27 = vector.load %arg10[%c0_20, %c0_21] : memref<8x128xf32, #tpu.memory_space<vmem>>, vector<8x128xf32>
    tpu.vector_store %arg10[%c0_20, %c0_21], %26 {strides = array<i32>} : memref<8x128xf32, #tpu.memory_space<vmem>>, vector<8x128xf32>,
    return
  }
  func.func @transform_0(%arg0: i32) -> (i32, i32) {
    %c0_i32 = arith.constant 0 : i32
    %c0_i32_0 = arith.constant 0 : i32
    return %arg0, %c0_i32 : i32, i32
  }
  func.func @transform_1(%arg0: i32) -> (i32, i32) {
    %c0_i32 = arith.constant 0 : i32
    %c0_i32_0 = arith.constant 0 : i32
    %c0_i32_1 = arith.constant 0 : i32
    return %c0_i32, %c0_i32_0 : i32, i32
  }
  func.func @transform_2(%arg0: i32) -> (i32, i32) {
    %c0_i32 = arith.constant 0 : i32
    %c0_i32_0 = arith.constant 0 : i32
    %c0_i32_1 = arith.constant 0 : i32
    return %c0_i32, %c0_i32_0 : i32, i32
  }
  func.func @transform_3(%arg0: i32) -> (i32, i32) {
    %c0_i32 = arith.constant 0 : i32
    %c0_i32_0 = arith.constant 0 : i32
    %c0_i32_1 = arith.constant 0 : i32
    return %c0_i32, %c0_i32_0 : i32, i32
  }
  func.func @transform_4(%arg0: i32) -> (i32, i32) {
    %c0_i32 = arith.constant 0 : i32
    %c0_i32_0 = arith.constant 0 : i32
    %c0_i32_1 = arith.constant 0 : i32
    return %c0_i32, %c0_i32_0 : i32, i32
  }
  func.func @transform_5(%arg0: i32) -> (i32, i32) {
    %c0_i32 = arith.constant 0 : i32
    %c0_i32_0 = arith.constant 0 : i32
    %c0_i32_1 = arith.constant 0 : i32
    return %c0_i32, %c0_i32_0 : i32, i32
  }
  func.func @transform_6(%arg0: i32) -> (i32, i32) {
    %c0_i32 = arith.constant 0 : i32
    %c0_i32_0 = arith.constant 0 : i32
    %c0_i32_1 = arith.constant 0 : i32
    return %c0_i32, %c0_i32_0 : i32, i32
  }
  func.func @transform_7(%arg0: i32) -> (i32, i32) {
    %c0_i32 = arith.constant 0 : i32
    %c0_i32_0 = arith.constant 0 : i32
    %c0_i32_1 = arith.constant 0 : i32
    return %c0_i32, %c0_i32_0 : i32, i32
  }
  func.func @transform_8(%arg0: i32) -> (i32, i32) {
    %c0_i32 = arith.constant 0 : i32
    %c0_i32_0 = arith.constant 0 : i32
    %c0_i32_1 = arith.constant 0 : i32
    return %c0_i32, %c0_i32_0 : i32, i32
  }
  func.func @transform_9(%arg0: i32) -> (i32, i32) {
    %c0_i32 = arith.constant 0 : i32
    %c0_i32_0 = arith.constant 0 : i32
    return %arg0, %c0_i32 : i32, i32
  }
}

</mosaic_0001>

<bundles_post_ra>
// kernel: _lambda_.1
= control target key start
LH: loop header
LB: loop body
LE: loop exit
PB: predicated region body
PF: predicated region fallthrough
CT: control target
= control target key end

     0   :  { %v681_v0 = vmov 0.0   ;;  %vm682_vm0 = vmmov 0   ;;  %s887_s1 = inlined_call_operand.vmem [shape: bf16[128,128], index: 1, kind: input, shape index: {}]   ;;  %s888_s3 = inlined_call_operand.vmem [shape: bf16[128,128], index: 3, kind: input, shape index: {}]   ;;  %s889_s0 = inlined_call_operand.vmem [shape: bf16[8,128], index: 0, kind: input, shape index: {}]   ;;  %s890_s5 = inlined_call_operand.vmem [shape: bf16[128,128], index: 5, kind: input, shape index: {}]   ;;  %s891_s2 = inlined_call_operand.vmem [shape: f32[1,128], index: 2, kind: input, shape index: {}]   ;;  %s892_s7 = inlined_call_operand.vmem [shape: bf16[128,128], index: 7, kind: input, shape index: {}]   ;;  %s893_s4 = inlined_call_operand.vmem [shape: f32[1,128], index: 4, kind: input, shape index: {}]   ;;  %s894_s6 = inlined_call_operand.vmem [shape: f32[1,128], index: 6, kind: input, shape index: {}]   ;;  %s895_s8 = inlined_call_operand.vmem [shape: f32[1,128], index: 8, kind: input, shape index: {}]   ;;  %s896_s9 = inlined_call_operand.vmem [shape: f32[8,128], index: 9, kind: output, shape index: {}]  }
   0x1   :  { %561 = vmatprep.subr.bf16.mxu0 %v681_v0  ;;  %v643_v1 = vld [vmem:[%s887_s1] sm:$0xff]   ;;  %577 = vmatprep.mubr.msk.bf16.mxu0 %vm682_vm0, %v681_v0  ;;  %v644_v2 = vld [vmem:[%s887_s1 + $0x8] sm:$0xff]   ;;  %v645_v3 = vld [vmem:[%s887_s1 + $0x10] sm:$0xff]  }
   0x2   :  { %581 = vmatprep.subr.bf16.mxu1 %v681_v0  ;;  %597 = vmatprep.mubr.msk.bf16.mxu1 %vm682_vm0, %v681_v0  ;;  %v651_v4 = vld [vmem:[%s888_s3] sm:$0xff]   ;;  %v646_v5 = vld [vmem:[%s887_s1 + $0x18] sm:$0xff]   ;;  %v652_v6 = vld [vmem:[%s888_s3 + $0x8] sm:$0xff]  }
   0x3   :  { %562 = vmatpush3.bf16.msra.mxu0 %v643_v1  ;;  %582 = vmatpush3.bf16.msra.mxu1 %v651_v4  ;;  %v647_v7 = vld [vmem:[%s887_s1 + $0x20] sm:$0xff]   ;;  %v653_v8 = vld [vmem:[%s888_s3 + $0x10] sm:$0xff]   ;;  %v648_v9 = vld [vmem:[%s887_s1 + $0x28] sm:$0xff]  }
   0x4   :  { %563 = vmatprep.subr.bf16.mxu0 %v681_v0  ;;  %583 = vmatprep.subr.bf16.mxu1 %v681_v0  ;;  %v654_v10 = vld [vmem:[%s888_s3 + $0x18] sm:$0xff]   ;;  %v649_v11 = vld [vmem:[%s887_s1 + $0x30] sm:$0xff]   ;;  %v33_v13 = vld [vmem:[%s889_s0] sm:$0xf] }
   0x5   :  { %v650_v12 = vld [vmem:[%s887_s1 + $0x38] sm:$0xff]   ;;  %v655_v14 = vld [vmem:[%s888_s3 + $0x20] sm:$0xff]   ;;  %v656_v15 = vld [vmem:[%s888_s3 + $0x28] sm:$0xff]  }
   0x6   :  { %v657_v16 = vld [vmem:[%s888_s3 + $0x30] sm:$0xff]   ;;  %v658_v17 = vld [vmem:[%s888_s3 + $0x38] sm:$0xff]   ;;  %v659_v18 = vld [vmem:[%s890_s5] sm:$0xff]  }
   0x7   :  { %564 = vmatpush3.bf16.msra.mxu0 %v644_v2  ;;  %584 = vmatpush3.bf16.msra.mxu1 %v652_v6  ;;  %v660_v19 = vld [vmem:[%s890_s5 + $0x8] sm:$0xff]   ;;  %v661_v20 = vld [vmem:[%s890_s5 + $0x10] sm:$0xff]   ;;  %v662_v21 = vld [vmem:[%s890_s5 + $0x18] sm:$0xff]  }
   0x8   :  { %565 = vmatprep.subr.bf16.mxu0 %v681_v0  ;;  %585 = vmatprep.subr.bf16.mxu1 %v681_v0  ;;  %v489_v22 = vld [vmem:[%s891_s2] ss:$0 sm:$0xff]  ;;  %v664_v31 = vld [vmem:[%s890_s5 + $0x28] sm:$0xff]   ;;  %v665_v32 = vld [vmem:[%s890_s5 + $0x30] sm:$0xff]  }
   0x9   :  { %v663_v30 = vld [vmem:[%s890_s5 + $0x20] sm:$0xff]   ;;  %v666_v33 = vld [vmem:[%s890_s5 + $0x38] sm:$0xff]   ;;  %v668_v35 = vld [vmem:[%s892_s7 + $0x8] sm:$0xff]  }
   0xa   :  { %v667_v34 = vld [vmem:[%s892_s7] sm:$0xff]   ;;  %v669_v36 = vld [vmem:[%s892_s7 + $0x10] sm:$0xff]   ;;  %v670_v37 = vld [vmem:[%s892_s7 + $0x18] sm:$0xff]  }
   0xb   :  { %566 = vmatpush3.bf16.msra.mxu0 %v645_v3  ;;  %586 = vmatpush3.bf16.msra.mxu1 %v653_v8  ;;  %v498_v38 = vld [vmem:[%s893_s4] ss:$0 sm:$0xff]  ;;  %v672_v47 = vld [vmem:[%s892_s7 + $0x28] sm:$0xff]   ;;  %v673_v48 = vld [vmem:[%s892_s7 + $0x30] sm:$0xff]  }
   0xc   :  { %567 = vmatprep.subr.bf16.mxu0 %v681_v0  ;;  %587 = vmatprep.subr.bf16.mxu1 %v681_v0  ;;  %v671_v46 = vld [vmem:[%s892_s7 + $0x20] sm:$0xff]   ;;  %v674_v49 = vld [vmem:[%s892_s7 + $0x38] sm:$0xff]  }
   0xd   :  { %v507_v50 = vld [vmem:[%s894_s6] ss:$0 sm:$0xff] }
   0xe   :  { %v516_v58 = vld [vmem:[%s895_s8] ss:$0 sm:$0xff] }
   0xf   :  { %568 = vmatpush3.bf16.msra.mxu0 %v646_v5  ;;  %588 = vmatpush3.bf16.msra.mxu1 %v654_v10 }
  0x10   :  { %569 = vmatprep.subr.bf16.mxu0 %v681_v0  ;;  %589 = vmatprep.subr.bf16.mxu1 %v681_v0 }
  0x13   :  { %570 = vmatpush3.bf16.msra.mxu0 %v647_v7  ;;  %590 = vmatpush3.bf16.msra.mxu1 %v655_v14 }
  0x14   :  { %571 = vmatprep.subr.bf16.mxu0 %v681_v0  ;;  %591 = vmatprep.subr.bf16.mxu1 %v681_v0 }
  0x17   :  { %572 = vmatpush3.bf16.msra.mxu0 %v648_v9  ;;  %592 = vmatpush3.bf16.msra.mxu1 %v656_v15 }
  0x18   :  { %573 = vmatprep.subr.bf16.mxu0 %v681_v0  ;;  %593 = vmatprep.subr.bf16.mxu1 %v681_v0 }
  0x1b   :  { %574 = vmatpush3.bf16.msra.mxu0 %v649_v11  ;;  %594 = vmatpush3.bf16.msra.mxu1 %v657_v16 }
  0x1c   :  { %575 = vmatprep.subr.bf16.mxu0 %v681_v0  ;;  %595 = vmatprep.subr.bf16.mxu1 %v681_v0 }
  0x1f   :  { %576 = vmatpush3.bf16.msra.mxu0 %v650_v12  ;;  %596 = vmatpush3.bf16.msra.mxu1 %v658_v17 }
  0x20   :  { %601 = vmatprep.subr.bf16.mxu0 %v681_v0  ;;  %621 = vmatprep.subr.bf16.mxu1 %v681_v0 }
  0x22   :  { %578 = vmatmul.mubr.bf16.vlgmr.msra.gmra.mrb[0].mxu0 %v33_v13 }
  0x23   :  { %617 = vmatprep.mubr.msk.bf16.mxu0 %vm682_vm0, %v681_v0  ;;  %602 = vmatpush3.bf16.msra.mxu0 %v659_v18 }
  0x24   :  { %603 = vmatprep.subr.bf16.mxu0 %v681_v0 }
  0x27   :  { %604 = vmatpush3.bf16.msra.mxu0 %v660_v19 }
  0x28   :  { %605 = vmatprep.subr.bf16.mxu0 %v681_v0 }
  0x2b   :  { %606 = vmatpush3.bf16.msra.mxu0 %v661_v20 }
  0x2c   :  { %607 = vmatprep.subr.bf16.mxu0 %v681_v0 }
  0x2f   :  { %608 = vmatpush3.bf16.msra.mxu0 %v662_v21 }
  0x30   :  { %609 = vmatprep.subr.bf16.mxu0 %v681_v0 }
  0x33   :  { %610 = vmatpush3.bf16.msra.mxu0 %v663_v30 }
  0x34   :  { %611 = vmatprep.subr.bf16.mxu0 %v681_v0 }
  0x37   :  { %612 = vmatpush3.bf16.msra.mxu0 %v664_v31 }
  0x38   :  { %613 = vmatprep.subr.bf16.mxu0 %v681_v0 }
  0x3b   :  { %614 = vmatpush3.bf16.msra.mxu0 %v665_v32 }
  0x3c   :  { %615 = vmatprep.subr.bf16.mxu0 %v681_v0 }
  0x3f   :  { %616 = vmatpush3.bf16.msra.mxu0 %v666_v33 }
  0xf5   :  { %v139_v23 = vpop.f32.mrb[0].mxu0 }
  0xf6   :  { %v140_v24 = vadd.f32 %v489_v22, %v139_v23  ;;  %v579_v25 = vpop.f32.mrb[1].mxu0 }
  0xf7   :  { %v142_v26 = vpop.f32.mrb[2].mxu0 }
  0xf8   :  { %675 = vtanh.f32 %v140_v24  ;;  %v580_v27 = vpop.f32.mrb[3].mxu0 }
 0x102   :  { %v676_v28 = vpop.eup %675 }
 0x103   :  { %v146_v29 = vpack.c.bf16 %v676_v28, %v676_v28 }
 0x105   :  { %598 = vmatmul.mubr.bf16.vlgmr.msra.gmra.mrb[0].mxu1 %v146_v29 }
 0x106   :  { %637 = vmatprep.mubr.msk.bf16.mxu1 %vm682_vm0, %v681_v0  ;;  %622 = vmatpush3.bf16.msra.mxu1 %v667_v34 }
 0x107   :  { %623 = vmatprep.subr.bf16.mxu1 %v681_v0 }
 0x10a   :  { %624 = vmatpush3.bf16.msra.mxu1 %v668_v35 }
 0x10b   :  { %625 = vmatprep.subr.bf16.mxu1 %v681_v0 }
 0x10e   :  { %626 = vmatpush3.bf16.msra.mxu1 %v669_v36 }
 0x10f   :  { %627 = vmatprep.subr.bf16.mxu1 %v681_v0 }
 0x112   :  { %628 = vmatpush3.bf16.msra.mxu1 %v670_v37 }
 0x113   :  { %629 = vmatprep.subr.bf16.mxu1 %v681_v0 }
 0x116   :  { %630 = vmatpush3.bf16.msra.mxu1 %v671_v46 }
 0x117   :  { %631 = vmatprep.subr.bf16.mxu1 %v681_v0 }
 0x11a   :  { %632 = vmatpush3.bf16.msra.mxu1 %v672_v47 }
 0x11b   :  { %633 = vmatprep.subr.bf16.mxu1 %v681_v0 }
 0x11e   :  { %634 = vmatpush3.bf16.msra.mxu1 %v673_v48 }
 0x11f   :  { %635 = vmatprep.subr.bf16.mxu1 %v681_v0 }
 0x122   :  { %636 = vmatpush3.bf16.msra.mxu1 %v674_v49 }
 0x1d8   :  { %v252_v39 = vpop.f32.mrb[0].mxu1 }
 0x1d9   :  { %v253_v40 = vadd.f32 %v498_v38, %v252_v39  ;;  %v599_v41 = vpop.f32.mrb[1].mxu1 }
 0x1da   :  { %v255_v42 = vpop.f32.mrb[2].mxu1 }
 0x1db   :  { %677 = vtanh.f32 %v253_v40  ;;  %v600_v43 = vpop.f32.mrb[3].mxu1 }
 0x1e5   :  { %v678_v44 = vpop.eup %677 }
 0x1e6   :  { %v259_v45 = vpack.c.bf16 %v678_v44, %v678_v44 }
 0x1e8   :  { %618 = vmatmul.mubr.bf16.vlgmr.msra.gmra.mrb[4].mxu0 %v259_v45 }
 0x2bb   :  { %v365_v51 = vpop.f32.mrb[4].mxu0 }
 0x2bc   :  { %v366_v52 = vadd.f32 %v507_v50, %v365_v51  ;;  %v619_v53 = vpop.f32.mrb[5].mxu0 }
 0x2bd   :  { %v368_v54 = vpop.f32.mrb[6].mxu0 }
 0x2be   :  { %679 = vtanh.f32 %v366_v52  ;;  %v620_v55 = vpop.f32.mrb[7].mxu0 }
 0x2c8   :  { %v680_v56 = vpop.eup %679 }
 0x2c9   :  { %v372_v57 = vpack.c.bf16 %v680_v56, %v680_v56 }
 0x2cb   :  { %638 = vmatmul.mubr.bf16.vlgmr.msra.gmra.mrb[4].mxu1 %v372_v57 }
 0x39e   :  { %v478_v59 = vpop.f32.mrb[4].mxu1 }
 0x39f   :  { %v479_v60 = vadd.f32 %v516_v58, %v478_v59  ;;  %v639_v61 = vpop.f32.mrb[5].mxu1 }
 0x3a0   :  { %v481_v62 = vpop.f32.mrb[6].mxu1 }
 0x3a1   :  { %484 = vst [vmem:[%s896_s9] sm:$0xff] %v479_v60  ;;  %v640_v63 = vpop.f32.mrb[7].mxu1 }

</bundles_post_ra>
